<compile_context>
chip_gen: v5e
topology: v5e:2x2
jax: 0.10.0
libtpu: 0.0.40
codegen_flags: <defaults>
</compile_context>

<pallas_src>
import functools

import jax
import jax.numpy as jnp
from jax.experimental import pallas as pl
from jax.experimental.pallas import tpu as pltpu

GENERATOR_PARAM = 100
LEAK_FACTOR = 0.2
NUM_TOPICS = 20
VOCAB_SIZE = 2000
BN_EPS = 1e-5

HID_PAD = 128  # hidden 100 -> 128 (lane-aligned MXU contraction dim)


# ---------------------------------------------------------------------------
# Kernel bodies (shared building blocks)
# ---------------------------------------------------------------------------
def _hidden_block(x, w1, b1, gamma, beta):
    """Linear(20->128 padded, bf16 MXU) -> LeakyReLU(0.2) -> BatchNorm1d (full-batch stats)."""
    h = jnp.dot(x, w1, preferred_element_type=jnp.float32)      # bf16 operands, f32 acc
    h = h + b1
    h = jnp.where(h > 0.0, h, LEAK_FACTOR * h)
    mean = jnp.mean(h, axis=0, keepdims=True)
    c = h - mean
    var = jnp.mean(c * c, axis=0, keepdims=True)                 # biased batch variance
    h = c * jax.lax.rsqrt(var + BN_EPS)
    return h * gamma + beta


def _softmax_block(h_bf16, w2, b2):
    """Linear(128->2000, bf16 operands, f32 acc) -> Softmax(dim=-1), exact normalization."""
    logits = jnp.dot(h_bf16, w2, preferred_element_type=jnp.float32)
    logits = logits + b2
    m = jnp.max(logits, axis=-1, keepdims=True)
    e = jnp.exp(logits - m)
    denom = jnp.sum(e, axis=-1, keepdims=True)
    inv = 1.0 / denom            # exact f32 reciprocal -> rows sum to 1 within f32 rounding
    return e * inv


def _fused_kernel(x_ref, w1_ref, b1_ref, gamma_ref, beta_ref, w2_ref, b2_ref, o_ref):
    """Whole forward for the full batch in one block (small-batch path)."""
    h = _hidden_block(x_ref[...], w1_ref[...], b1_ref[...], gamma_ref[...], beta_ref[...])
    probs = _softmax_block(h.astype(jnp.bfloat16), w2_ref[...], b2_ref[...])
    o_ref[...] = probs.astype(o_ref.dtype)


def _hidden_kernel(x_ref, w1_ref, b1_ref, gamma_ref, beta_ref, h_ref):
    """Stage 1: full batch in one block (BatchNorm statistics are full-batch-correct)."""
    h = _hidden_block(x_ref[...], w1_ref[...], b1_ref[...], gamma_ref[...], beta_ref[...])
    h_ref[...] = h.astype(h_ref.dtype)                           # bf16 feed for the big matmul


def _vocab_kernel(h_ref, w2_ref, b2_ref, o_ref):
    """Stage 2 (batch tiled): Linear(128->2000) -> Softmax, stored directly at (tb, 2000)."""
    o_ref[...] = _softmax_block(h_ref[...], w2_ref[...], b2_ref[...]).astype(o_ref.dtype)


# ---------------------------------------------------------------------------
# Parameter preparation
# ---------------------------------------------------------------------------
def prepare_params(w1, b1, gamma, beta, w2, b2):
    """Pad hidden 100->128 once; cast MXU weights to bf16 (f32 accumulation in-kernel)."""
    ph = HID_PAD - GENERATOR_PARAM
    w1p = jnp.pad(w1.astype(jnp.float32), ((0, 0), (0, ph))).astype(jnp.bfloat16)
    b1p = jnp.pad(b1.astype(jnp.float32), ((0, 0), (0, ph)))
    gp = jnp.pad(gamma.astype(jnp.float32), ((0, 0), (0, ph)))
    bp = jnp.pad(beta.astype(jnp.float32), ((0, 0), (0, ph)))
    w2p = jnp.pad(w2.astype(jnp.float32), ((0, ph), (0, 0))).astype(jnp.bfloat16)
    b2p = b2.astype(jnp.float32)
    return w1p, b1p, gp, bp, w2p, b2p


def _default_stage2_config():
    """(batch_tile, vmem_limit_bytes) per TPU generation; conservative fallback for v7x/unknown."""
    try:
        kind = jax.devices()[0].device_kind.lower()
    except Exception:  # pragma: no cover - device query failure
        kind = ""
    if "v5" in kind:
        return 1024, 64 << 20      # 128 MiB physical VMEM; HBM-bound -> biggest tiles
    if "v6" in kind:
        return 1024, 48 << 20      # 128 MiB physical VMEM
    return 256, 32 << 20           # v7x: 64 MiB VMEM per TC; also safe fallback


# ---------------------------------------------------------------------------
# Forward
# ---------------------------------------------------------------------------
def generator_forward(noise, params, *, batch_tile=None, vmem_limit_bytes=None):
    if batch_tile is None or vmem_limit_bytes is None:
        d_tile, d_vmem = _default_stage2_config()
        batch_tile = d_tile if batch_tile is None else batch_tile
        vmem_limit_bytes = d_vmem if vmem_limit_bytes is None else vmem_limit_bytes
    return _generator_forward(noise, params, batch_tile, vmem_limit_bytes)


@functools.partial(jax.jit, static_argnames=("batch_tile", "vmem_limit_bytes"))
def _generator_forward(noise, params, batch_tile, vmem_limit_bytes):
    w1p, b1p, gp, bp, w2p, b2p = params
    B = noise.shape[0]
    x = noise.astype(jnp.bfloat16)

    def full(shape):
        return pl.BlockSpec(shape, lambda *_: (0,) * len(shape))

    # Pick the stage-2 batch tile. BatchNorm needs full-batch statistics, so stage 1
    # (or the fused kernel) always sees the whole batch in one block.
    if B <= batch_tile:
        if B >= 128 and B % 32 == 0:
            tb = B // 2            # grid_b == 2 -> both v7x TensorCores do useful work
        else:
            tb = None              # fused single-kernel path
    else:
        tb = batch_tile

    if tb is None:
        # ---- Small batch: one fused kernel (one launch, no h HBM roundtrip) ----
        return pl.pallas_call(
            _fused_kernel,
            out_shape=jax.ShapeDtypeStruct((B, VOCAB_SIZE), jnp.float32),
            grid=(),
            in_specs=[
                full((B, NUM_TOPICS)),
                full((NUM_TOPICS, HID_PAD)),
                full((1, HID_PAD)),
                full((1, HID_PAD)),
                full((1, HID_PAD)),
                full((HID_PAD, VOCAB_SIZE)),
                full((1, VOCAB_SIZE)),
            ],
            out_specs=full((B, VOCAB_SIZE)),
            compiler_params=pltpu.CompilerParams(vmem_limit_bytes=vmem_limit_bytes),
        )(x, w1p, b1p, gp, bp, w2p, b2p)

    # ---- Stage 1: full batch in one block (full-batch BatchNorm statistics) ----
    h = pl.pallas_call(
        _hidden_kernel,
        out_shape=jax.ShapeDtypeStruct((B, HID_PAD), jnp.bfloat16),
        grid=(),
        in_specs=[
            full((B, NUM_TOPICS)),
            full((NUM_TOPICS, HID_PAD)),
            full((1, HID_PAD)),
            full((1, HID_PAD)),
            full((1, HID_PAD)),
        ],
        out_specs=full((B, HID_PAD)),
        compiler_params=pltpu.CompilerParams(vmem_limit_bytes=vmem_limit_bytes),
    )(x, w1p, b1p, gp, bp)

    # ---- Stage 2: batch-tiled grid, resident bf16 weights, unpadded (B, 2000) output ----
    grid_b = pl.cdiv(B, tb)        # ragged last tile is fine: rows are independent,
                                   # OOB rows are never written back
    out = pl.pallas_call(
        _vocab_kernel,
        out_shape=jax.ShapeDtypeStruct((B, VOCAB_SIZE), jnp.float32),
        grid=(grid_b,),
        in_specs=[
            pl.BlockSpec((tb, HID_PAD), lambda i: (i, 0)),
            pl.BlockSpec((HID_PAD, VOCAB_SIZE), lambda i: (0, 0)),   # resident, DMA'd once
            pl.BlockSpec((1, VOCAB_SIZE), lambda i: (0, 0)),
        ],
        out_specs=pl.BlockSpec((tb, VOCAB_SIZE), lambda i: (i, 0)),
        compiler_params=pltpu.CompilerParams(
            dimension_semantics=("parallel",),      # megacore sharding on v7x
            vmem_limit_bytes=vmem_limit_bytes,
        ),
    )(h, w2p, b2p)
    return out


# ---------------------------------------------------------------------------
# Reference / self-test
# ---------------------------------------------------------------------------
def init_params(key):
    # Deterministic, PyTorch-style uniform(-1/sqrt(fan_in), 1/sqrt(fan_in)) init.
    k1, k2, k3, k4 = jax.random.split(key, 4)
    bound1 = 1.0 / jnp.sqrt(jnp.float32(NUM_TOPICS))
    bound2 = 1.0 / jnp.sqrt(jnp.float32(GENERATOR_PARAM))
    w1 = jax.random.uniform(k1, (NUM_TOPICS, GENERATOR_PARAM), jnp.float32, -bound1, bound1)
    b1 = jax.random.uniform(k2, (1, GENERATOR_PARAM), jnp.float32, -bound1, bound1)
    gamma = jnp.ones((1, GENERATOR_PARAM), jnp.float32)   # BatchNorm1d affine weight init
    beta = jnp.zeros((1, GENERATOR_PARAM), jnp.float32)   # BatchNorm1d affine bias init
    w2 = jax.random.uniform(k3, (GENERATOR_PARAM, VOCAB_SIZE), jnp.float32, -bound2, bound2)
    b2 = jax.random.uniform(k4, (1, VOCAB_SIZE), jnp.float32, -bound2, bound2)
    return w1, b1, gamma, beta, w2, b2


def reference_forward(noise, w1, b1, gamma, beta, w2, b2):
    h = noise @ w1 + b1
    h = jnp.where(h > 0.0, h, LEAK_FACTOR * h)
    mean = jnp.mean(h, axis=0, keepdims=True)
    var = jnp.mean((h - mean) ** 2, axis=0, keepdims=True)
    h = (h - mean) / jnp.sqrt(var + BN_EPS) * gamma + beta
    logits = h @ w2 + b2
    return jax.nn.softmax(logits, axis=-1)


if __name__ == "__main__":
    key = jax.random.PRNGKey(0)
    kx1, kx2, kp = jax.random.split(key, 3)
    raw_params = init_params(kp)
    params = prepare_params(*raw_params)

    # --- Small batch -> fused single-kernel path ---
    B1 = 8
    noise1 = jax.random.normal(kx1, (B1, NUM_TOPICS), jnp.float32)
    out1 = jax.block_until_ready(generator_forward(noise1, params))
    ref1 = reference_forward(noise1, *raw_params)
    assert out1.shape == (B1, VOCAB_SIZE)
    assert bool(jnp.all(jnp.isfinite(out1)))
    assert bool(jnp.allclose(jnp.sum(out1, axis=-1), 1.0, atol=1e-3))  # exact recip: ~1e-6 obs
    assert bool(jnp.allclose(out1, ref1, atol=1e-3, rtol=0.0))          # bf16 MXU operands

    # --- Larger batch -> two-stage batch-tiled path (grid of 2, 'parallel' batch axis) ---
    B2 = 256
    noise2 = jax.random.normal(kx2, (B2, NUM_TOPICS), jnp.float32)
    out2 = jax.block_until_ready(
        generator_forward(noise2, params, batch_tile=128, vmem_limit_bytes=32 << 20))
    ref2 = reference_forward(noise2, *raw_params)
    assert out2.shape == (B2, VOCAB_SIZE)
    assert bool(jnp.all(jnp.isfinite(out2)))
    assert bool(jnp.allclose(jnp.sum(out2, axis=-1), 1.0, atol=1e-3))
    assert bool(jnp.allclose(out2, ref2, atol=1e-3, rtol=0.0))

    print("KERNEL_OK")
</pallas_src>

<mosaic_0001>
module attributes {stable_mosaic.version = 11 : i64} {
  func.func @_fused_kernel(%arg0: memref<8x20xbf16, #tpu.memory_space<vmem>>, %arg1: memref<20x128xbf16, #tpu.memory_space<vmem>>, %arg2: memref<1x128xf32, #tpu.memory_space<vmem>>, %arg3: memref<1x128xf32, #tpu.memory_space<vmem>>, %arg4: memref<1x128xf32, #tpu.memory_space<vmem>>, %arg5: memref<128x2000xbf16, #tpu.memory_space<vmem>>, %arg6: memref<1x2000xf32, #tpu.memory_space<vmem>>, %arg7: memref<8x2000xf32, #tpu.memory_space<vmem>>) attributes {dimension_semantics = [], scalar_prefetch = 0 : i64, scratch_operands = 0 : i64, tpu.core_type = #tpu.core_type<tc>} {
    %c0 = arith.constant 0 : index
    %c0_0 = arith.constant 0 : index
    %0 = vector.load %arg0[%c0, %c0_0] : memref<8x20xbf16, #tpu.memory_space<vmem>>, vector<8x20xbf16>
    %c0_1 = arith.constant 0 : index
    %c0_2 = arith.constant 0 : index
    %1 = vector.load %arg1[%c0_1, %c0_2] : memref<20x128xbf16, #tpu.memory_space<vmem>>, vector<20x128xbf16>
    %c0_3 = arith.constant 0 : index
    %c0_4 = arith.constant 0 : index
    %2 = vector.load %arg2[%c0_3, %c0_4] : memref<1x128xf32, #tpu.memory_space<vmem>>, vector<1x128xf32>
    %c0_5 = arith.constant 0 : index
    %c0_6 = arith.constant 0 : index
    %3 = vector.load %arg3[%c0_5, %c0_6] : memref<1x128xf32, #tpu.memory_space<vmem>>, vector<1x128xf32>
    %c0_7 = arith.constant 0 : index
    %c0_8 = arith.constant 0 : index
    %4 = vector.load %arg4[%c0_7, %c0_8] : memref<1x128xf32, #tpu.memory_space<vmem>>, vector<1x128xf32>
    %cst = arith.constant dense<0.000000e+00> : vector<8x128xf32>
    %5 = tpu.matmul %0, %1, %cst {dimension_numbers = #tpu.dot_dimension_numbers<[1], [0], [0], [1], [0, 0, 1, 1], [], []>} : vector<8x20xbf16>, vector<20x128xbf16>, vector<8x128xf32> -> vector<8x128xf32>
    %6 = vector.broadcast %2 : vector<1x128xf32> to vector<8x128xf32>
    %7 = arith.addf %5, %6 : vector<8x128xf32>
    %cst_9 = arith.constant 0.000000e+00 : f32
    %8 = vector.broadcast %cst_9 : f32 to vector<8x128xf32>
    %9 = arith.cmpf ogt, %7, %8 : vector<8x128xf32>
    %cst_10 = arith.constant 2.000000e-01 : f32
    %10 = vector.broadcast %cst_10 : f32 to vector<8x128xf32>
    %11 = arith.mulf %10, %7 : vector<8x128xf32>
    %12 = arith.select %9, %7, %11 : vector<8x128xi1>, vector<8x128xf32>
    %cst_11 = arith.constant dense<0.000000e+00> : vector<128xf32>
    %13 = vector.multi_reduction <add>, %12, %cst_11 [0] : vector<8x128xf32> to vector<128xf32>
    %14 = vector.shape_cast %13 : vector<128xf32> to vector<1x128xf32>
    %cst_12 = arith.constant 8.000000e+00 : f32
    %15 = vector.broadcast %cst_12 : f32 to vector<1x128xf32>
    %16 = arith.divf %14, %15 : vector<1x128xf32>
    %17 = vector.broadcast %16 : vector<1x128xf32> to vector<8x128xf32>
    %18 = arith.subf %12, %17 : vector<8x128xf32>
    %19 = arith.mulf %18, %18 : vector<8x128xf32>
    %cst_13 = arith.constant dense<0.000000e+00> : vector<128xf32>
    %20 = vector.multi_reduction <add>, %19, %cst_13 [0] : vector<8x128xf32> to vector<128xf32>
    %21 = vector.shape_cast %20 : vector<128xf32> to vector<1x128xf32>
    %cst_14 = arith.constant 8.000000e+00 : f32
    %22 = vector.broadcast %cst_14 : f32 to vector<1x128xf32>
    %23 = arith.divf %21, %22 : vector<1x128xf32>
    %cst_15 = arith.constant 9.99999974E-6 : f32
    %24 = vector.broadcast %cst_15 : f32 to vector<1x128xf32>
    %25 = arith.addf %23, %24 : vector<1x128xf32>
    %26 = math.rsqrt %25 : vector<1x128xf32>
    %27 = vector.broadcast %26 : vector<1x128xf32> to vector<8x128xf32>
    %28 = arith.mulf %18, %27 : vector<8x128xf32>
    %29 = vector.broadcast %3 : vector<1x128xf32> to vector<8x128xf32>
    %30 = arith.mulf %28, %29 : vector<8x128xf32>
    %31 = vector.broadcast %4 : vector<1x128xf32> to vector<8x128xf32>
    %32 = arith.addf %30, %31 : vector<8x128xf32>
    %33 = arith.truncf %32 : vector<8x128xf32> to vector<8x128xbf16>
    %c0_16 = arith.constant 0 : index
    %c0_17 = arith.constant 0 : index
    %34 = vector.load %arg5[%c0_16, %c0_17] : memref<128x2000xbf16, #tpu.memory_space<vmem>>, vector<128x2000xbf16>
    %c0_18 = arith.constant 0 : index
    %c0_19 = arith.constant 0 : index
    %35 = vector.load %arg6[%c0_18, %c0_19] : memref<1x2000xf32, #tpu.memory_space<vmem>>, vector<1x2000xf32>
    %cst_20 = arith.constant dense<0.000000e+00> : vector<8x2000xf32>
    %36 = tpu.matmul %33, %34, %cst_20 {dimension_numbers = #tpu.dot_dimension_numbers<[1], [0], [0], [1], [0, 0, 1, 1], [], []>} : vector<8x128xbf16>, vector<128x2000xbf16>, vector<8x2000xf32> -> vector<8x2000xf32>
    %37 = vector.broadcast %35 : vector<1x2000xf32> to vector<8x2000xf32>
    %38 = arith.addf %36, %37 : vector<8x2000xf32>
    %cst_21 = arith.constant dense<0xFF800000> : vector<8xf32>
    %39 = vector.multi_reduction <maximumf>, %38, %cst_21 [1] : vector<8x2000xf32> to vector<8xf32>
    %40 = vector.shape_cast %39 : vector<8xf32> to vector<8x1xf32>
    %41 = vector.broadcast %40 : vector<8x1xf32> to vector<8x2000xf32>
    %42 = arith.subf %38, %41 : vector<8x2000xf32>
    %43 = math.exp %42 : vector<8x2000xf32>
    %cst_22 = arith.constant dense<0.000000e+00> : vector<8xf32>
    %44 = vector.multi_reduction <add>, %43, %cst_22 [1] : vector<8x2000xf32> to vector<8xf32>
    %45 = vector.shape_cast %44 : vector<8xf32> to vector<8x1xf32>
    %cst_23 = arith.constant 1.000000e+00 : f32
    %46 = vector.broadcast %cst_23 : f32 to vector<8x1xf32>
    %47 = arith.divf %46, %45 : vector<8x1xf32>
    %48 = vector.broadcast %47 : vector<8x1xf32> to vector<8x2000xf32>
    %49 = arith.mulf %43, %48 : vector<8x2000xf32>
    %c0_24 = arith.constant 0 : index
    %c0_25 = arith.constant 0 : index
    %50 = vector.load %arg7[%c0_24, %c0_25] : memref<8x2000xf32, #tpu.memory_space<vmem>>, vector<8x2000xf32>
    tpu.vector_store %arg7[%c0_24, %c0_25], %49 {strides = array<i32>} : memref<8x2000xf32, #tpu.memory_space<vmem>>, vector<8x2000xf32>,
    return
  }
}

</mosaic_0001>

<bundles_post_ra>
// kernel: _generator_forward.1
= control target key start
LH: loop header
LB: loop body
LE: loop exit
PB: predicated region body
PF: predicated region fallthrough
CT: control target
= control target key end

     0   :  { %vm51_vm0 = vcmask 1041408   ;;  %s2947_s0 = inlined_call_operand.vmem [shape: bf16[8,20], index: 0, kind: input, shape index: {}]   ;;  %s2948_s1 = inlined_call_operand.vmem [shape: bf16[20,128], index: 1, kind: input, shape index: {}]   ;;  %s2949_s2 = inlined_call_operand.vmem [shape: f32[1,128], index: 2, kind: input, shape index: {}]   ;;  %s2950_s3 = inlined_call_operand.vmem [shape: f32[1,128], index: 3, kind: input, shape index: {}]   ;;  %s2951_s4 = inlined_call_operand.vmem [shape: f32[1,128], index: 4, kind: input, shape index: {}]   ;;  %s2952_s5 = inlined_call_operand.vmem [shape: bf16[128,2000], index: 5, kind: input, shape index: {}]   ;;  %s2953_s6 = inlined_call_operand.vmem [shape: f32[1,2000], index: 6, kind: input, shape index: {}]   ;;  %s2954_s7 = inlined_call_operand.hbm [shape: f32[8,2000], index: 7, kind: output, shape index: {}]  }
   0x1   :  { %v31_v0 = vld [vmem:[%s2948_s1 + $0x8] sm:$0x3] }
   0x2   :  { %v43_v1 = vunpack.c.l.b16 %v31_v0 }
   0x3   :  { %12 = vsyncpa [#allocation3], 0  ;;  %v1792_v4 = vld [vmem:[%s2948_s1] sm:$0xff]  ;;  %vm47_vm1 = vcmask 162816   ;;  %v1738_v11 = vld [vmem:[%s2952_s5 + $0x388] sm:$0xf] }
   0x4   :  { %v45_v2 = vpack.c.b16 %v43_v1, %v43_v1  ;;  %v28_v5 = vld [vmem:[%s2947_s0] sm:$0xf]  ;;  %v1905_v8 = vld [vmem:[%s2952_s5 + $0x384] sm:$0xf]  ;;  %v1914_v12 = vld [vmem:[%s2952_s5 + $0x3c4] sm:$0xf0] }
   0x5   :  { %v1730_v6 = vld [vmem:[%s2952_s5 + $0x380] sm:$0xf]  ;;  %v1732_v10 = vld [vmem:[%s2952_s5 + $0x3c0] sm:$0xf0]  ;;  %v1739_v14 = vor.u32 %v1914_v12, %v1738_v11  ;;  %v1906_v15 = vld [vmem:[%s2952_s5 + $0x38c] sm:$0xf] }
   0x6   :  { %v53_v3 = vsel %vm51_vm0, %v45_v2, 0  ;;  %v1913_v7 = vld [vmem:[%s2952_s5 + $0x3bc] sm:$0xf0]  ;;  %v1735_v13 = vor.u32 %v1905_v8, %v1732_v10  ;;  %v1740_v16 = vld [vmem:[%s2952_s5 + $0x3c8] sm:$0xf0]  ;;  %v1990_v49 = vmov 8.0  }
   0x7   :  { %61 = vmatpush.bf16.msra.mxu0 %v53_v3  ;;  %v1731_v9 = vor.u32 %v1913_v7, %v1730_v6  ;;  %v1743_v17 = vor.u32 %v1906_v15, %v1740_v16  ;;  %945 = vmatpush.bf16.msra.mxu3 %v1739_v14  ;;  %v1666_v18 = vld [vmem:[%s2952_s5 + $0x300] sm:$0xf]  ;;  %v1889_v21 = vld [vmem:[%s2952_s5 + $0x304] sm:$0xf]  ;;  %v1674_v23 = vld [vmem:[%s2952_s5 + $0x308] sm:$0xf]  ;;  %1926 = vrcp.f32 %v1990_v49 }
   0x8   :  { %932 = vmatpush.bf16.msra.mxu2 %v1735_v13  ;;  %v1897_v19 = vld [vmem:[%s2952_s5 + $0x33c] sm:$0xf0]  ;;  %v1668_v22 = vld [vmem:[%s2952_s5 + $0x340] sm:$0xf0]  ;;  %v1898_v25 = vld [vmem:[%s2952_s5 + $0x344] sm:$0xf0] }
   0x9   :  { %919 = vmatpush.bf16.msra.mxu1 %v1731_v9  ;;  %v1667_v20 = vor.u32 %v1897_v19, %v1666_v18  ;;  %v1671_v24 = vor.u32 %v1889_v21, %v1668_v22  ;;  %v1890_v26 = vld [vmem:[%s2952_s5 + $0x30c] sm:$0xf]  ;;  %v1675_v27 = vor.u32 %v1898_v25, %v1674_v23  ;;  %v1602_v30 = vld [vmem:[%s2952_s5 + $0x280] sm:$0xf]  ;;  %v1873_v32 = vld [vmem:[%s2952_s5 + $0x284] sm:$0xf] }
   0xa   :  { %v1676_v28 = vld [vmem:[%s2952_s5 + $0x348] sm:$0xf0]  ;;  %v1881_v31 = vld [vmem:[%s2952_s5 + $0x2bc] sm:$0xf0]  ;;  %v1604_v34 = vld [vmem:[%s2952_s5 + $0x2c0] sm:$0xf0] }
   0xb   :  { %62 = vmatpush.bf16.msra.mxu0 %v1792_v4  ;;  %v1679_v29 = vor.u32 %v1890_v26, %v1676_v28  ;;  %946 = vmatpush.bf16.msra.mxu3 %v1675_v27  ;;  %v1603_v33 = vor.u32 %v1881_v31, %v1602_v30  ;;  %v1610_v35 = vld [vmem:[%s2952_s5 + $0x288] sm:$0xf]  ;;  %v1607_v37 = vor.u32 %v1873_v32, %v1604_v34  ;;  %v1874_v39 = vld [vmem:[%s2952_s5 + $0x28c] sm:$0xf]  ;;  %v1538_v42 = vld [vmem:[%s2952_s5 + $0x200] sm:$0xf] }
   0xc   :  { %933 = vmatpush.bf16.msra.mxu2 %v1671_v24  ;;  %v1882_v36 = vld [vmem:[%s2952_s5 + $0x2c4] sm:$0xf0]  ;;  %v1612_v40 = vld [vmem:[%s2952_s5 + $0x2c8] sm:$0xf0]  ;;  %v1865_v43 = vld [vmem:[%s2952_s5 + $0x23c] sm:$0xf0] }
   0xd   :  { %920 = vmatpush.bf16.msra.mxu1 %v1667_v20  ;;  %v1611_v38 = vor.u32 %v1882_v36, %v1610_v35  ;;  %v1615_v41 = vor.u32 %v1874_v39, %v1612_v40  ;;  %v1857_v44 = vld [vmem:[%s2952_s5 + $0x204] sm:$0xf]  ;;  %v1539_v45 = vor.u32 %v1865_v43, %v1538_v42  ;;  %v1546_v47 = vld [vmem:[%s2952_s5 + $0x208] sm:$0xf]  ;;  %v1858_v52 = vld [vmem:[%s2952_s5 + $0x20c] sm:$0xf]  ;;  %v2161_v3 = vpop.eup %1926 }
   0xe   :  { %1279 = vmatmul.msk.bf16.vlgmr.msra.gmra.mxu0 %vm47_vm1, %v28_v5  ;;  %v1540_v46 = vld [vmem:[%s2952_s5 + $0x240] sm:$0xf0]  ;;  %v1866_v48 = vld [vmem:[%s2952_s5 + $0x244] sm:$0xf0]  ;;  %v1548_v53 = vld [vmem:[%s2952_s5 + $0x248] sm:$0xf0]  ;;  %vm82_vm3 = vweird.f32 %v2161_v3 }
   0xf   :  { %958 = vmatpush.bf16.msrb.mxu0 %v1743_v17  ;;  %947 = vmatpush.bf16.msra.mxu3 %v1611_v38  ;;  %v1543_v50 = vor.u32 %v1857_v44, %v1540_v46  ;;  %v1547_v51 = vor.u32 %v1866_v48, %v1546_v47  ;;  %v1551_v54 = vor.u32 %v1858_v52, %v1548_v53  ;;  %v1474_v55 = vld [vmem:[%s2952_s5 + $0x180] sm:$0xf]  ;;  %v1841_v57 = vld [vmem:[%s2952_s5 + $0x184] sm:$0xf]  ;;  %v1482_v60 = vld [vmem:[%s2952_s5 + $0x188] sm:$0xf] }
  0x10   :  { %934 = vmatpush.bf16.msra.mxu2 %v1607_v37  ;;  %v1849_v56 = vld [vmem:[%s2952_s5 + $0x1bc] sm:$0xf0]  ;;  %v1476_v59 = vld [vmem:[%s2952_s5 + $0x1c0] sm:$0xf0]  ;;  %v1850_v61 = vld [vmem:[%s2952_s5 + $0x1c4] sm:$0xf0] }
  0x11   :  { %921 = vmatpush.bf16.msra.mxu1 %v1603_v33  ;;  %v1475_v58 = vor.u32 %v1849_v56, %v1474_v55  ;;  %v1479_v62 = vor.u32 %v1841_v57, %v1476_v59  ;;  %v1483_v63 = vor.u32 %v1850_v61, %v1482_v60  ;;  %v1842_v0 = vld [vmem:[%s2952_s5 + $0x18c] sm:$0xf]  ;;  %v1410_v4 = vld [vmem:[%s2952_s5 + $0x100] sm:$0xf]  ;;  %v1825_v6 = vld [vmem:[%s2952_s5 + $0x104] sm:$0xf] }
  0x12   :  { %v1484_v1 = vld [vmem:[%s2952_s5 + $0x1c8] sm:$0xf0]  ;;  %v1833_v5 = vld [vmem:[%s2952_s5 + $0x13c] sm:$0xf0]  ;;  %v1412_v8 = vld [vmem:[%s2952_s5 + $0x140] sm:$0xf0] }
  0x13   :  { %959 = vmatpush.bf16.msrb.mxu0 %v1679_v29  ;;  %948 = vmatpush.bf16.msra.mxu3 %v1547_v51  ;;  %v1487_v2 = vor.u32 %v1842_v0, %v1484_v1  ;;  %v1411_v7 = vor.u32 %v1833_v5, %v1410_v4  ;;  %v1418_v9 = vld [vmem:[%s2952_s5 + $0x108] sm:$0xf]  ;;  %v1415_v11 = vor.u32 %v1825_v6, %v1412_v8  ;;  %v1826_v13 = vld [vmem:[%s2952_s5 + $0x10c] sm:$0xf]  ;;  %v1923_v15 = vld [vmem:[%s2949_s2] ss:$0 sm:$0xff] }
  0x14   :  { %935 = vmatpush.bf16.msra.mxu2 %v1543_v50  ;;  %v1834_v10 = vld [vmem:[%s2952_s5 + $0x144] sm:$0xf0]  ;;  %v1420_v14 = vld [vmem:[%s2952_s5 + $0x148] sm:$0xf0]  ;;  %v78_v16 = vmul.f32 8.0, %v2161_v3  ;;  %vm1138_vm7 = vcmask 654336  }
  0x15   :  { %922 = vmatpush.bf16.msra.mxu1 %v1539_v45  ;;  %v1419_v12 = vor.u32 %v1834_v10, %v1418_v9  ;;  %v1423_v17 = vor.u32 %v1826_v13, %v1420_v14  ;;  %v1346_v18 = vld [vmem:[%s2952_s5 + $0x80] sm:$0xf]  ;;  %v1809_v20 = vld [vmem:[%s2952_s5 + $0x84] sm:$0xf]  ;;  %v1354_v23 = vld [vmem:[%s2952_s5 + $0x88] sm:$0xf] }
  0x16   :  { %v1817_v19 = vld [vmem:[%s2952_s5 + $0xbc] sm:$0xf0]  ;;  %v1348_v22 = vld [vmem:[%s2952_s5 + $0xc0] sm:$0xf0]  ;;  %v1818_v24 = vld [vmem:[%s2952_s5 + $0xc4] sm:$0xf0] }
  0x17   :  { %960 = vmatpush.bf16.msrb.mxu0 %v1615_v41  ;;  %949 = vmatpush.bf16.msra.mxu3 %v1483_v63  ;;  %v1347_v21 = vor.u32 %v1817_v19, %v1346_v18  ;;  %v1351_v25 = vor.u32 %v1809_v20, %v1348_v22  ;;  %v1355_v26 = vor.u32 %v1818_v24, %v1354_v23  ;;  %v1810_v27 = vld [vmem:[%s2952_s5 + $0x8c] sm:$0xf]  ;;  %v79_v30 = vsub.f32 1.0, %v78_v16  ;;  %v1282_v33 = vld [vmem:[%s2952_s5] sm:$0xf] }
  0x18   :  { %936 = vmatpush.bf16.msra.mxu2 %v1479_v62  ;;  %v1356_v28 = vld [vmem:[%s2952_s5 + $0xc8] sm:$0xf0]  ;;  %v1801_v34 = vld [vmem:[%s2952_s5 + $0x3c] sm:$0xf0]  ;;  %v1793_v35 = vld [vmem:[%s2952_s5 + $0x4] sm:$0xf] }
  0x19   :  { %923 = vmatpush.bf16.msra.mxu1 %v1475_v58  ;;  %v1359_v31 = vor.u32 %v1810_v27, %v1356_v28  ;;  %v1283_v36 = vor.u32 %v1801_v34, %v1282_v33  ;;  %v1284_v37 = vld [vmem:[%s2952_s5 + $0x40] sm:$0xf0]  ;;  %v1290_v38 = vld [vmem:[%s2952_s5 + $0x8] sm:$0xf]  ;;  %v1794_v43 = vld [vmem:[%s2952_s5 + $0xc] sm:$0xf]  ;;  %v80_v57 = vmul.f32 %v2161_v3, %v79_v30 }
  0x1a   :  { %v1802_v39 = vld [vmem:[%s2952_s5 + $0x44] sm:$0xf0]  ;;  %v1287_v41 = vor.u32 %v1793_v35, %v1284_v37  ;;  %v1292_v44 = vld [vmem:[%s2952_s5 + $0x48] sm:$0xf0]  ;;  %v1746_v45 = vld [vmem:[%s2952_s5 + $0x390] sm:$0xf] }
  0x1b   :  { %961 = vmatpush.bf16.msrb.mxu0 %v1551_v54  ;;  %950 = vmatpush.bf16.msra.mxu3 %v1419_v12  ;;  %v1291_v42 = vor.u32 %v1802_v39, %v1290_v38  ;;  %v1915_v46 = vld [vmem:[%s2952_s5 + $0x3cc] sm:$0xf0]  ;;  %v1295_v48 = vor.u32 %v1794_v43, %v1292_v44  ;;  %v1907_v50 = vld [vmem:[%s2952_s5 + $0x394] sm:$0xf]  ;;  %v1754_v52 = vld [vmem:[%s2952_s5 + $0x398] sm:$0xf] }
  0x1c   :  { %937 = vmatpush.bf16.msra.mxu2 %v1415_v11  ;;  %v1747_v49 = vor.u32 %v1915_v46, %v1746_v45  ;;  %v1748_v51 = vld [vmem:[%s2952_s5 + $0x3d0] sm:$0xf0]  ;;  %v1916_v55 = vld [vmem:[%s2952_s5 + $0x3d4] sm:$0xf0]  ;;  %v1908_v56 = vld [vmem:[%s2952_s5 + $0x39c] sm:$0xf] }
  0x1d   :  { %924 = vmatpush.bf16.msra.mxu1 %v1411_v7  ;;  %v1751_v54 = vor.u32 %v1907_v50, %v1748_v51  ;;  %v1755_v58 = vor.u32 %v1916_v55, %v1754_v52  ;;  %v1756_v59 = vld [vmem:[%s2952_s5 + $0x3d8] sm:$0xf0]  ;;  %v1682_v60 = vld [vmem:[%s2952_s5 + $0x310] sm:$0xf]  ;;  %v1684_v4 = vld [vmem:[%s2952_s5 + $0x350] sm:$0xf0] }
  0x1e   :  { %v1899_v61 = vld [vmem:[%s2952_s5 + $0x34c] sm:$0xf0]  ;;  %v1759_v0 = vor.u32 %v1908_v56, %v1756_v59  ;;  %v1690_v5 = vld [vmem:[%s2952_s5 + $0x318] sm:$0xf]  ;;  %v1892_v8 = vld [vmem:[%s2952_s5 + $0x31c] sm:$0xf] }
  0x1f   :  { %962 = vmatpush.bf16.msrb.mxu0 %v1487_v2  ;;  %951 = vmatpush.bf16.msra.mxu3 %v1355_v26  ;;  %v1683_v1 = vor.u32 %v1899_v61, %v1682_v60  ;;  %v1891_v2 = vld [vmem:[%s2952_s5 + $0x314] sm:$0xf]  ;;  %v1900_v7 = vld [vmem:[%s2952_s5 + $0x354] sm:$0xf0]  ;;  %v1692_v9 = vld [vmem:[%s2952_s5 + $0x358] sm:$0xf0] }
  0x20   :  { %938 = vmatpush.bf16.msra.mxu2 %v1351_v25  ;;  %v1687_v6 = vor.u32 %v1891_v2, %v1684_v4  ;;  %v1691_v11 = vor.u32 %v1900_v7, %v1690_v5  ;;  %v1695_v12 = vor.u32 %v1892_v8, %v1692_v9  ;;  %v1618_v13 = vld [vmem:[%s2952_s5 + $0x290] sm:$0xf]  ;;  %v1620_v18 = vld [vmem:[%s2952_s5 + $0x2d0] sm:$0xf0]  ;;  %v1626_v19 = vld [vmem:[%s2952_s5 + $0x298] sm:$0xf] }
  0x21   :  { %925 = vmatpush.bf16.msra.mxu1 %v1347_v21  ;;  %v1883_v14 = vld [vmem:[%s2952_s5 + $0x2cc] sm:$0xf0]  ;;  %v1884_v22 = vld [vmem:[%s2952_s5 + $0x2d4] sm:$0xf0]  ;;  %v1876_v23 = vld [vmem:[%s2952_s5 + $0x29c] sm:$0xf] }
  0x22   :  { %v1619_v16 = vor.u32 %v1883_v14, %v1618_v13  ;;  %v1628_v24 = vld [vmem:[%s2952_s5 + $0x2d8] sm:$0xf0]  ;;  %v1627_v25 = vor.u32 %v1884_v22, %v1626_v19  ;;  %v1554_v28 = vld [vmem:[%s2952_s5 + $0x210] sm:$0xf]  ;;  %v1556_v33 = vld [vmem:[%s2952_s5 + $0x250] sm:$0xf0] }
  0x23   :  { %963 = vmatpush.bf16.msrb.mxu0 %v1423_v17  ;;  %952 = vmatpush.bf16.msra.mxu3 %v1291_v42  ;;  %v1875_v17 = vld [vmem:[%s2952_s5 + $0x294] sm:$0xf]  ;;  %v1631_v27 = vor.u32 %v1876_v23, %v1628_v24  ;;  %v1562_v34 = vld [vmem:[%s2952_s5 + $0x218] sm:$0xf]  ;;  %v1860_v37 = vld [vmem:[%s2952_s5 + $0x21c] sm:$0xf] }
  0x24   :  { %939 = vmatpush.bf16.msra.mxu2 %v1287_v41  ;;  %v1623_v21 = vor.u32 %v1875_v17, %v1620_v18  ;;  %v1564_v38 = vld [vmem:[%s2952_s5 + $0x258] sm:$0xf0]  ;;  %v1490_v42 = vld [vmem:[%s2952_s5 + $0x190] sm:$0xf]  ;;  %v1843_v44 = vld [vmem:[%s2952_s5 + $0x194] sm:$0xf] }
  0x25   :  { %926 = vmatpush.bf16.msra.mxu1 %v1283_v36  ;;  %v1567_v41 = vor.u32 %v1860_v37, %v1564_v38  ;;  %v1851_v43 = vld [vmem:[%s2952_s5 + $0x1cc] sm:$0xf0]  ;;  %v1492_v46 = vld [vmem:[%s2952_s5 + $0x1d0] sm:$0xf0]  ;;  %v1844_v52 = vld [vmem:[%s2952_s5 + $0x19c] sm:$0xf] }
  0x26   :  { %v1491_v45 = vor.u32 %v1851_v43, %v1490_v42  ;;  %v1495_v51 = vor.u32 %v1843_v44, %v1492_v46  ;;  %v1428_v60 = vld [vmem:[%s2952_s5 + $0x150] sm:$0xf0]  ;;  %v1434_v61 = vld [vmem:[%s2952_s5 + $0x118] sm:$0xf]  ;;  %v1436_v2 = vld [vmem:[%s2952_s5 + $0x158] sm:$0xf0] }
  0x27   :  { %964 = vmatpush.bf16.msrb.mxu0 %v1359_v31  ;;  %997 = vmatpush.bf16.msrb.mxu3 %v1755_v58  ;;  %v1827_v58 = vld [vmem:[%s2952_s5 + $0x114] sm:$0xf]  ;;  %v1362_v7 = vld [vmem:[%s2952_s5 + $0x90] sm:$0xf]  ;;  %v1812_v17 = vld [vmem:[%s2952_s5 + $0x9c] sm:$0xf] }
  0x28   :  { %984 = vmatpush.bf16.msrb.mxu2 %v1751_v54  ;;  %v1819_v8 = vld [vmem:[%s2952_s5 + $0xcc] sm:$0xf0]  ;;  %v1372_v18 = vld [vmem:[%s2952_s5 + $0xd8] sm:$0xf0]  ;;  %v1795_v23 = vld [vmem:[%s2952_s5 + $0x14] sm:$0xf] }
  0x29   :  { %971 = vmatpush.bf16.msrb.mxu1 %v1747_v49  ;;  %v1852_v49 = vld [vmem:[%s2952_s5 + $0x1d4] sm:$0xf0]  ;;  %v1363_v9 = vor.u32 %v1819_v8, %v1362_v7  ;;  %v1803_v22 = vld [vmem:[%s2952_s5 + $0x4c] sm:$0xf0]  ;;  %v1924_v43 = vld [vmem:[%s2950_s3] ss:$0 sm:$0xff] }
  0x2a   :  { %v1634_v8 = vld [vmem:[%s2952_s5 + $0x2a0] sm:$0xf] }
  0x2b   :  { %965 = vmatpush.bf16.msrb.mxu0 %v1295_v48  ;;  %998 = vmatpush.bf16.msrb.mxu3 %v1691_v11  ;;  %v1498_v48 = vld [vmem:[%s2952_s5 + $0x198] sm:$0xf]  ;;  %v1364_v11 = vld [vmem:[%s2952_s5 + $0xd0] sm:$0xf0] }
  0x2c   :  { %985 = vmatpush.bf16.msrb.mxu2 %v1687_v6  ;;  %v1499_v54 = vor.u32 %v1852_v49, %v1498_v48  ;;  %v1762_v48 = vld [vmem:[%s2952_s5 + $0x3a0] sm:$0xf] }
  0x2d   :  { %972 = vmatpush.bf16.msrb.mxu1 %v1683_v1  ;;  %v1828_v1 = vld [vmem:[%s2952_s5 + $0x11c] sm:$0xf]  ;;  %v1917_v49 = vld [vmem:[%s2952_s5 + $0x3dc] sm:$0xf0] }
  0x2e   :  { %v1439_v6 = vor.u32 %v1828_v1, %v1436_v2  ;;  %v1706_v1 = vld [vmem:[%s2952_s5 + $0x328] sm:$0xf] }
  0x2f   :  { %1010 = vmatpush.bf16.msra.mxu0 %v1759_v0  ;;  %999 = vmatpush.bf16.msrb.mxu3 %v1627_v25  ;;  %v1431_v0 = vor.u32 %v1827_v58, %v1428_v60  ;;  %v1300_v25 = vld [vmem:[%s2952_s5 + $0x50] sm:$0xf0]  ;;  %v1901_v60 = vld [vmem:[%s2952_s5 + $0x35c] sm:$0xf0]  ;;  %v1902_v2 = vld [vmem:[%s2952_s5 + $0x364] sm:$0xf0] }
  0x30   :  { %986 = vmatpush.bf16.msrb.mxu2 %v1623_v21  ;;  %v1298_v21 = vld [vmem:[%s2952_s5 + $0x10] sm:$0xf] }
  0x31   :  { %973 = vmatpush.bf16.msrb.mxu1 %v1619_v16  ;;  %v1299_v24 = vor.u32 %v1803_v22, %v1298_v21  ;;  %v1869_v21 = vld [vmem:[%s2952_s5 + $0x25c] sm:$0xf0] }
  0x33   :  { %1011 = vmatpush.bf16.msra.mxu0 %v1695_v12  ;;  %v1370_v12 = vld [vmem:[%s2952_s5 + $0x98] sm:$0xf] }
  0x37   :  { %1012 = vmatpush.bf16.msra.mxu0 %v1631_v27  ;;  %v1804_v27 = vld [vmem:[%s2952_s5 + $0x54] sm:$0xf0] }
  0x3b   :  { %1013 = vmatpush.bf16.msra.mxu0 %v1567_v41 }
  0x8b   :  { %v64_v29 = vpop.f32.mrf.mxu0 }
  0x8c   :  { %v65_v32 = vadd.f32 %v1923_v15, %v64_v29  ;;  %v81_v15 = vadd.f32 %v2161_v3, %v80_v57  ;;  %v1867_v29 = vld [vmem:[%s2952_s5 + $0x24c] sm:$0xf0] }
  0x8d   :  { %v1555_v31 = vor.u32 %v1867_v29, %v1554_v28  ;;  %v1835_v57 = vld [vmem:[%s2952_s5 + $0x14c] sm:$0xf0]  ;;  %v1303_v29 = vor.u32 %v1795_v23, %v1300_v25  ;;  %v1572_v25 = vld [vmem:[%s2952_s5 + $0x260] sm:$0xf0] }
  0x8e   :  { %vm68_vm2 = vcmp.gt.f32.partialorder %v65_v32, 0.0  ;;  %v69_v40 = vmul.f32 0.2, %v65_v32  ;;  %v2325_v30 = vsel %vm82_vm3, %v2161_v3, %v81_v15  ;;  %v1868_v3 = vld [vmem:[%s2952_s5 + $0x254] sm:$0xf0] }
  0x8f   :  { %v1563_v39 = vor.u32 %v1868_v3, %v1562_v34  ;;  %974 = vmatpush.bf16.msrb.mxu1 %v1555_v31  ;;  %v1820_v15 = vld [vmem:[%s2952_s5 + $0xd4] sm:$0xf0]  ;;  %v1796_v31 = vld [vmem:[%s2952_s5 + $0x1c] sm:$0xf] }
  0x90   :  { %v2245_v47 = vsel %vm68_vm2, %v65_v32, %v69_v40  ;;  %v1859_v32 = vld [vmem:[%s2952_s5 + $0x214] sm:$0xf]  ;;  %v1371_v16 = vor.u32 %v1820_v15, %v1370_v12  ;;  %v1877_v12 = vld [vmem:[%s2952_s5 + $0x2a4] sm:$0xf]  ;;  %v1886_v15 = vld [vmem:[%s2952_s5 + $0x2e4] sm:$0xf0] }
  0x91   :  { %v71_v53 = vrot.slane %v2245_v47, 4  ;;  %v1559_v36 = vor.u32 %v1859_v32, %v1556_v33  ;;  %1000 = vmatpush.bf16.msrb.mxu3 %v1563_v39  ;;  %v1308_v32 = vld [vmem:[%s2952_s5 + $0x58] sm:$0xf0] }
  0x93   :  { %v72_v62 = vadd.f32 %v71_v53, %v2245_v47  ;;  %v66_v63 = vpop.f32.mrf.mxu0  ;;  %987 = vmatpush.bf16.msrb.mxu2 %v1559_v36  ;;  %v1500_v53 = vld [vmem:[%s2952_s5 + $0x1d8] sm:$0xf0]  ;;  %975 = vmatpush.bf16.msrb.mxu1 %v1491_v45  ;;  %v1925_v45 = vld [vmem:[%s2951_s4] ss:$0 sm:$0xff]  ;;  %s1266_s4 = sshll.u32 %s2954_s7, 4  ;;  %s1267_s4 = int_to_ptr.hbm [resolvable:$true] %s1266_s4 }
  0x94   :  { %v1503_v56 = vor.u32 %v1844_v52, %v1500_v53  ;;  %v1770_v52 = vld [vmem:[%s2952_s5 + $0x3a8] sm:$0xf] }
  0x95   :  { %v73_v10 = vrot.slane %v72_v62, 2  ;;  %1001 = vmatpush.bf16.msrb.mxu3 %v1499_v54  ;;  %v1918_v54 = vld [vmem:[%s2952_s5 + $0x3e4] sm:$0xf0] }
  0x96   :  { %1014 = vmatpush.bf16.msra.mxu0 %v1503_v56  ;;  %v1772_v56 = vld [vmem:[%s2952_s5 + $0x3e8] sm:$0xf0] }
  0x97   :  { %v74_v20 = vadd.f32 %v73_v10, %v72_v62  ;;  %v1836_v62 = vld [vmem:[%s2952_s5 + $0x154] sm:$0xf0]  ;;  %988 = vmatpush.bf16.msrb.mxu2 %v1495_v51  ;;  %v1811_v10 = vld [vmem:[%s2952_s5 + $0x94] sm:$0xf]  ;;  %v1909_v51 = vld [vmem:[%s2952_s5 + $0x3a4] sm:$0xf] }
  0x98   :  { %v1435_v4 = vor.u32 %v1836_v62, %v1434_v61  ;;  %v1367_v14 = vor.u32 %v1811_v10, %v1364_v11  ;;  %v1771_v61 = vor.u32 %v1918_v54, %v1770_v52  ;;  %v1707_v10 = vor.u32 %v1902_v2, %v1706_v1  ;;  %v1830_v52 = vld [vmem:[%s2952_s5 + $0x12c] sm:$0xf]  ;;  %v1314_v2 = vld [vmem:[%s2952_s5 + $0x20] sm:$0xf] }
  0x99   :  { %v75_v26 = vrot.slane %v74_v20, 1  ;;  %v1388_v1 = vld [vmem:[%s2952_s5 + $0xe8] sm:$0xf0] }
  0x9a   :  { %1002 = vmatpush.bf16.msrb.mxu3 %v1435_v4  ;;  %1015 = vmatpush.bf16.msra.mxu0 %v1439_v6  ;;  %v1894_v4 = vld [vmem:[%s2952_s5 + $0x32c] sm:$0xf] }
  0x9b   :  { %v76_v35 = vadd.f32 %v75_v26, %v74_v20  ;;  %989 = vmatpush.bf16.msrb.mxu2 %v1431_v0  ;;  %v1375_v20 = vor.u32 %v1812_v17, %v1372_v18  ;;  %v1306_v26 = vld [vmem:[%s2952_s5 + $0x18] sm:$0xf]  ;;  %v1700_v0 = vld [vmem:[%s2952_s5 + $0x360] sm:$0xf0]  ;;  %v1644_v17 = vld [vmem:[%s2952_s5 + $0x2e8] sm:$0xf0] }
  0x9c   :  { %v1307_v33 = vor.u32 %v1804_v27, %v1306_v26  ;;  %v1578_v26 = vld [vmem:[%s2952_s5 + $0x228] sm:$0xf] }
  0x9d   :  { %v84_v40 = vmul.f32 %v2325_v30, %v76_v35  ;;  %v1311_v35 = vor.u32 %v1796_v31, %v1308_v32  ;;  %v1870_v27 = vld [vmem:[%s2952_s5 + $0x264] sm:$0xf0] }
  0x9e   :  { %1003 = vmatpush.bf16.msrb.mxu3 %v1371_v16  ;;  %1016 = vmatpush.bf16.msra.mxu0 %v1375_v20  ;;  %v1878_v16 = vld [vmem:[%s2952_s5 + $0x2ac] sm:$0xf]  ;;  %v1570_v20 = vld [vmem:[%s2952_s5 + $0x220] sm:$0xf] }
  0x9f   :  { %v2365_v50 = vsub.f32 %v2245_v47, %v84_v40  ;;  %v1426_v47 = vld [vmem:[%s2952_s5 + $0x110] sm:$0xf]  ;;  %990 = vmatpush.bf16.msrb.mxu2 %v1367_v14  ;;  %v1642_v14 = vld [vmem:[%s2952_s5 + $0x2a8] sm:$0xf]  ;;  %v1647_v23 = vor.u32 %v1878_v16, %v1644_v17  ;;  %v1571_v31 = vor.u32 %v1869_v21, %v1570_v20  ;;  %v1911_v17 = vld [vmem:[%s2952_s5 + $0x3b4] sm:$0xf] }
  0xa0   :  { %v1427_v59 = vor.u32 %v1835_v57, %v1426_v47  ;;  %v1763_v57 = vor.u32 %v1917_v49, %v1762_v48  ;;  %v1643_v22 = vor.u32 %v1886_v15, %v1642_v14  ;;  %v1829_v48 = vld [vmem:[%s2952_s5 + $0x124] sm:$0xf]  ;;  %v1324_v14 = vld [vmem:[%s2952_s5 + $0x68] sm:$0xf0]  ;;  %v1778_v15 = vld [vmem:[%s2952_s5 + $0x3b0] sm:$0xf] }
  0xa1   :  { %v86_v55 = vmul.f32 %v2365_v50, %v2365_v50  ;;  %v1444_v49 = vld [vmem:[%s2952_s5 + $0x160] sm:$0xf0]  ;;  %v1919_v16 = vld [vmem:[%s2952_s5 + $0x3ec] sm:$0xf0] }
  0xa2   :  { %976 = vmatpush.bf16.msrb.mxu1 %v1427_v59  ;;  %1004 = vmatpush.bf16.msrb.mxu3 %v1307_v33  ;;  %v1698_v59 = vld [vmem:[%s2952_s5 + $0x320] sm:$0xf] }
  0xa3   :  { %v87_v63 = vrot.slane %v86_v55, 4  ;;  %991 = vmatpush.bf16.msrb.mxu2 %v1303_v29  ;;  %1017 = vmatpush.bf16.msra.mxu0 %v1311_v35  ;;  %v1699_v6 = vor.u32 %v1901_v60, %v1698_v59  ;;  %v1580_v29 = vld [vmem:[%s2952_s5 + $0x268] sm:$0xf0]  ;;  %v1506_v33 = vld [vmem:[%s2952_s5 + $0x1a0] sm:$0xf]  ;;  %v1579_v35 = vor.u32 %v1870_v27, %v1578_v26  ;;  %v1779_v27 = vor.u32 %v1919_v16, %v1778_v15 }
  0xa4   :  { %v1813_v60 = vld [vmem:[%s2952_s5 + $0xa4] sm:$0xf]  ;;  %v1839_v15 = vld [vmem:[%s2952_s5 + $0x16c] sm:$0xf0] }
  0xa5   :  { %v88_v5 = vadd.f32 %v87_v63, %v86_v55  ;;  %v1910_v55 = vld [vmem:[%s2952_s5 + $0x3ac] sm:$0xf]  ;;  %v1893_v63 = vld [vmem:[%s2952_s5 + $0x324] sm:$0xf] }
  0xa6   :  { %977 = vmatpush.bf16.msrb.mxu1 %v1363_v9  ;;  %v1775_v62 = vor.u32 %v1910_v55, %v1772_v56  ;;  %v1703_v7 = vor.u32 %v1893_v63, %v1700_v0  ;;  %v1885_v9 = vld [vmem:[%s2952_s5 + $0x2dc] sm:$0xf0]  ;;  %v1447_v55 = vor.u32 %v1829_v48, %v1444_v49  ;;  %v1822_v63 = vld [vmem:[%s2952_s5 + $0xe4] sm:$0xf0]  ;;  %v1814_v0 = vld [vmem:[%s2952_s5 + $0xac] sm:$0xf] }
  0xa7   :  { %v89_v13 = vrot.slane %v88_v5, 2  ;;  %v1635_v18 = vor.u32 %v1885_v9, %v1634_v8  ;;  %v1378_v56 = vld [vmem:[%s2952_s5 + $0xa0] sm:$0xf]  ;;  %v1316_v8 = vld [vmem:[%s2952_s5 + $0x60] sm:$0xf0] }
  0xa8   :  { %v1888_v48 = vld [vmem:[%s2952_s5 + $0x2f4] sm:$0xf0]  ;;  %v1880_v49 = vld [vmem:[%s2952_s5 + $0x2bc] sm:$0xf] }
  0xa9   :  { %v90_v19 = vadd.f32 %v89_v13, %v88_v5  ;;  %v1708_v5 = vld [vmem:[%s2952_s5 + $0x368] sm:$0xf0]  ;;  %v1636_v13 = vld [vmem:[%s2952_s5 + $0x2e0] sm:$0xf0] }
  0xaa   :  { %978 = vmatpush.bf16.msrb.mxu1 %v1299_v24  ;;  %v1711_v11 = vor.u32 %v1894_v4, %v1708_v5  ;;  %v1861_v24 = vld [vmem:[%s2952_s5 + $0x224] sm:$0xf] }
  0xab   :  { %v91_v28 = vrot.slane %v90_v19, 1  ;;  %v1575_v32 = vor.u32 %v1861_v24, %v1572_v25  ;;  %v1788_v24 = vld [vmem:[%s2952_s5 + $0x3f8] sm:$0xf0] }
  0xad   :  { %v92_v34 = vadd.f32 %v91_v28, %v90_v19  ;;  %v1639_v19 = vor.u32 %v1877_v12, %v1636_v13  ;;  %v1862_v28 = vld [vmem:[%s2952_s5 + $0x22c] sm:$0xf]  ;;  %v1806_v12 = vld [vmem:[%s2952_s5 + $0x64] sm:$0xf0] }
  0xae   :  { %v1798_v13 = vld [vmem:[%s2952_s5 + $0x2c] sm:$0xf] }
  0xaf   :  { %v93_v36 = vmul.f32 %v92_v34, %v2325_v30  ;;  %v1853_v34 = vld [vmem:[%s2952_s5 + $0x1dc] sm:$0xf0]  ;;  %v1327_v26 = vor.u32 %v1798_v13, %v1324_v14  ;;  %v1458_v14 = vld [vmem:[%s2952_s5 + $0x130] sm:$0xf] }
  0xb1   :  { %v94_v3 = vadd.f32 1e-05, %v93_v36  ;;  %v1583_v36 = vor.u32 %v1862_v28, %v1580_v29  ;;  %v1714_v29 = vld [vmem:[%s2952_s5 + $0x330] sm:$0xf] }
  0xb3   :  { %1928 = vrsqrt.f32 %v94_v3  ;;  %vm101_vm5 = vweird.f32 %v94_v3 }
  0xb9   :  { %v1929_v37 = vpop.eup %1928 }
  0xba   :  { %v96_v38 = vmul.f32 %v1929_v37, %v94_v3  ;;  %vm102_vm4 = vweird.f32 %v1929_v37  ;;  %v1845_v3 = vld [vmem:[%s2952_s5 + $0x1a4] sm:$0xf] }
  0xbb   :  { %vm103_vm6 = vmor %vm101_vm5, %vm102_vm4 }
  0xbc   :  { %v97_v39 = vmul.f32 %v1929_v37, %v96_v38  ;;  %v1514_v38 = vld [vmem:[%s2952_s5 + $0x1a8] sm:$0xf] }
  0xbe   :  { %v98_v40 = vmul.f32 0.5, %v97_v39  ;;  %v1854_v39 = vld [vmem:[%s2952_s5 + $0x1e4] sm:$0xf0] }
  0xc0   :  { %v99_v41 = vsub.f32 1.5, %v98_v40  ;;  %v1846_v40 = vld [vmem:[%s2952_s5 + $0x1ac] sm:$0xf] }
  0xc2   :  { %v100_v42 = vmul.f32 %v1929_v37, %v99_v41  ;;  %v1516_v41 = vld [vmem:[%s2952_s5 + $0x1e8] sm:$0xf0] }
  0xc4   :  { %v104_v44 = vsel %vm103_vm6, %v1929_v37, %v100_v42  ;;  %v1508_v37 = vld [vmem:[%s2952_s5 + $0x1e0] sm:$0xf0]  ;;  %v1507_v42 = vor.u32 %v1853_v34, %v1506_v33  ;;  %v1895_v34 = vld [vmem:[%s2952_s5 + $0x334] sm:$0xf] }
  0xc5   :  { %v105_v30 = vmul.f32 %v104_v44, %v2365_v50  ;;  %v1764_v50 = vld [vmem:[%s2952_s5 + $0x3e0] sm:$0xf0]  ;;  %v1442_v44 = vld [vmem:[%s2952_s5 + $0x120] sm:$0xf] }
  0xc6   :  { %v1767_v58 = vor.u32 %v1909_v51, %v1764_v50  ;;  %v1450_v51 = vld [vmem:[%s2952_s5 + $0x128] sm:$0xf] }
  0xc7   :  { %v109_v46 = vmul.f32 %v1924_v43, %v105_v30  ;;  %v1511_v43 = vor.u32 %v1845_v3, %v1508_v37  ;;  %v1837_v30 = vld [vmem:[%s2952_s5 + $0x15c] sm:$0xf0]  ;;  %v1838_v50 = vld [vmem:[%s2952_s5 + $0x164] sm:$0xf0]  ;;  %v1904_v3 = vld [vmem:[%s2952_s5 + $0x374] sm:$0xf0] }
  0xc8   :  { %v1443_v54 = vor.u32 %v1837_v30, %v1442_v44  ;;  %v1896_v37 = vld [vmem:[%s2952_s5 + $0x33c] sm:$0xf]  ;;  %v1879_v30 = vld [vmem:[%s2952_s5 + $0x2b4] sm:$0xf] }
  0xc9   :  { %v113_v53 = vadd.f32 %v1925_v45, %v109_v46  ;;  %v1515_v45 = vor.u32 %v1854_v39, %v1514_v38  ;;  %v1519_v46 = vor.u32 %v1846_v40, %v1516_v41  ;;  %v1724_v38 = vld [vmem:[%s2952_s5 + $0x378] sm:$0xf0]  ;;  %v1650_v41 = vld [vmem:[%s2952_s5 + $0x2b0] sm:$0xf] }
  0xca   :  { %v1727_v44 = vor.u32 %v1896_v37, %v1724_v38  ;;  %v1330_v38 = vld [vmem:[%s2952_s5 + $0x30] sm:$0xf] }
  0xcb   :  { %v2479_v47 = vpack.c.bf16 %v113_v53, %v113_v53  ;;  %v1452_v53 = vld [vmem:[%s2952_s5 + $0x168] sm:$0xf0] }
  0xcc   :  { %v1455_v59 = vor.u32 %v1830_v52, %v1452_v53  ;;  %v1586_v53 = vld [vmem:[%s2952_s5 + $0x230] sm:$0xf] }
  0xcd   :  { %927 = vmatmul.bf16.vlgmr.msra.gmra.mxu1 %v2479_v47  ;;  %940 = vmatmul.bf16.vlgmr.msra.gmra.mxu2 %v2479_v47 }
  0xce   :  { %953 = vmatmul.bf16.vlgmr.msra.gmra.mxu3 %v2479_v47  ;;  %966 = vmatmul.bf16.vlgmr.msrb.gmra.mxu0 %v2479_v47 }
  0xcf   :  { %1023 = vmatpush.bf16.msra.mxu1 %v1763_v57  ;;  %1036 = vmatpush.bf16.msra.mxu2 %v1767_v58  ;;  %v1821_v57 = vld [vmem:[%s2952_s5 + $0xdc] sm:$0xf0]  ;;  %v1451_v58 = vor.u32 %v1838_v50, %v1450_v51  ;;  %v1660_v51 = vld [vmem:[%s2952_s5 + $0x2f8] sm:$0xf0] }
  0xd0   :  { %1049 = vmatpush.bf16.msra.mxu3 %v1771_v61  ;;  %1062 = vmatpush.bf16.msrb.mxu0 %v1775_v62  ;;  %v1380_v61 = vld [vmem:[%s2952_s5 + $0xe0] sm:$0xf0]  ;;  %v1386_v62 = vld [vmem:[%s2952_s5 + $0xa8] sm:$0xf]  ;;  %v1379_v4 = vor.u32 %v1821_v57, %v1378_v56  ;;  %v1663_v56 = vor.u32 %v1880_v49, %v1660_v51  ;;  %v1863_v57 = vld [vmem:[%s2952_s5 + $0x234] sm:$0xf] }
  0xd1   :  { %v1383_v5 = vor.u32 %v1813_v60, %v1380_v61  ;;  %v1387_v9 = vor.u32 %v1822_v63, %v1386_v62  ;;  %v1872_v60 = vld [vmem:[%s2952_s5 + $0x274] sm:$0xf0]  ;;  %v1864_v61 = vld [vmem:[%s2952_s5 + $0x23c] sm:$0xf] }
  0xd2   :  { %v1596_v62 = vld [vmem:[%s2952_s5 + $0x278] sm:$0xf0] }
  0xd3   :  { %1024 = vmatpush.bf16.msra.mxu1 %v1699_v6  ;;  %1037 = vmatpush.bf16.msra.mxu2 %v1703_v7  ;;  %v1805_v6 = vld [vmem:[%s2952_s5 + $0x5c] sm:$0xf0]  ;;  %v1797_v7 = vld [vmem:[%s2952_s5 + $0x24] sm:$0xf] }
  0xd4   :  { %1050 = vmatpush.bf16.msra.mxu3 %v1707_v10  ;;  %1063 = vmatpush.bf16.msrb.mxu0 %v1711_v11  ;;  %v1391_v10 = vor.u32 %v1814_v0, %v1388_v1  ;;  %v1322_v11 = vld [vmem:[%s2952_s5 + $0x28] sm:$0xf]  ;;  %v1315_v20 = vor.u32 %v1805_v6, %v1314_v2  ;;  %v1319_v21 = vor.u32 %v1797_v7, %v1316_v8  ;;  %v1522_v1 = vld [vmem:[%s2952_s5 + $0x1b0] sm:$0xf]  ;;  %v1847_v6 = vld [vmem:[%s2952_s5 + $0x1b4] sm:$0xf] }
  0xd5   :  { %v1323_v25 = vor.u32 %v1806_v12, %v1322_v11  ;;  %v1855_v2 = vld [vmem:[%s2952_s5 + $0x1ec] sm:$0xf0]  ;;  %v1524_v7 = vld [vmem:[%s2952_s5 + $0x1f0] sm:$0xf0]  ;;  %v1530_v8 = vld [vmem:[%s2952_s5 + $0x1b8] sm:$0xf] }
  0xd6   :  { %v1532_v11 = vld [vmem:[%s2952_s5 + $0x1f8] sm:$0xf0]  ;;  %v1523_v12 = vor.u32 %v1855_v2, %v1522_v1  ;;  %v1527_v13 = vor.u32 %v1847_v6, %v1524_v7 }
  0xd7   :  { %1025 = vmatpush.bf16.msra.mxu1 %v1635_v18  ;;  %1038 = vmatpush.bf16.msra.mxu2 %v1639_v19  ;;  %v1780_v18 = vld [vmem:[%s2952_s5 + $0x3f0] sm:$0xf0]  ;;  %v1786_v19 = vld [vmem:[%s2952_s5 + $0x3b8] sm:$0xf] }
  0xd8   :  { %1051 = vmatpush.bf16.msra.mxu3 %v1643_v22  ;;  %1064 = vmatpush.bf16.msrb.mxu0 %v1647_v23  ;;  %v1920_v22 = vld [vmem:[%s2952_s5 + $0x3f4] sm:$0xf0]  ;;  %v1912_v23 = vld [vmem:[%s2952_s5 + $0x3bc] sm:$0xf]  ;;  %v1783_v28 = vor.u32 %v1911_v17, %v1780_v18  ;;  %v1831_v18 = vld [vmem:[%s2952_s5 + $0x134] sm:$0xf] }
  0xd9   :  { %v1791_v33 = vor.u32 %v1912_v23, %v1788_v24  ;;  %v1468_v23 = vld [vmem:[%s2952_s5 + $0x178] sm:$0xf0]  ;;  %v1459_v24 = vor.u32 %v1839_v15, %v1458_v14  ;;  %v244_v14 = vld [vmem:[%s2953_s6 + $0x8] sm:$0xff] }
  0xdb   :  { %1026 = vmatpush.bf16.msra.mxu1 %v1571_v31  ;;  %1039 = vmatpush.bf16.msra.mxu2 %v1575_v32  ;;  %v1903_v31 = vld [vmem:[%s2952_s5 + $0x36c] sm:$0xf0]  ;;  %v1787_v32 = vor.u32 %v1920_v22, %v1786_v19  ;;  %v1460_v19 = vld [vmem:[%s2952_s5 + $0x170] sm:$0xf0]  ;;  %v1832_v22 = vld [vmem:[%s2952_s5 + $0x13c] sm:$0xf] }
  0xdc   :  { %1052 = vmatpush.bf16.msra.mxu3 %v1579_v35  ;;  %1065 = vmatpush.bf16.msrb.mxu0 %v1583_v36  ;;  %v1716_v35 = vld [vmem:[%s2952_s5 + $0x370] sm:$0xf0]  ;;  %v1722_v36 = vld [vmem:[%s2952_s5 + $0x338] sm:$0xf]  ;;  %v1715_v39 = vor.u32 %v1903_v31, %v1714_v29  ;;  %v1471_v29 = vor.u32 %v1832_v22, %v1468_v23  ;;  %v255_v22 = vperm.slane %v244_v14, 0  ;;  %v256_v23 = vperm.slane %v244_v14, 1 }
  0xdd   :  { %979 = vmatmul.bf16.vlgmr.msrb.gmra.mxu1 %v2479_v47  ;;  %992 = vmatmul.bf16.vlgmr.msrb.gmra.mxu2 %v2479_v47  ;;  %v1719_v40 = vor.u32 %v1895_v34, %v1716_v35  ;;  %v1815_v31 = vld [vmem:[%s2952_s5 + $0xb4] sm:$0xf]  ;;  %v1824_v34 = vld [vmem:[%s2952_s5 + $0xf4] sm:$0xf0]  ;;  %v1816_v35 = vld [vmem:[%s2952_s5 + $0xbc] sm:$0xf] }
  0xde   :  { %1005 = vmatmul.bf16.vlgmr.msrb.gmra.mxu3 %v2479_v47  ;;  %1018 = vmatmul.bf16.vlgmr.msra.gmra.mxu0 %v2479_v47 }
  0xdf   :  { %1027 = vmatpush.bf16.msra.mxu1 %v1507_v42  ;;  %1040 = vmatpush.bf16.msra.mxu2 %v1511_v43  ;;  %v1887_v42 = vld [vmem:[%s2952_s5 + $0x2ec] sm:$0xf0]  ;;  %v1723_v43 = vor.u32 %v1904_v3, %v1722_v36  ;;  %v1404_v36 = vld [vmem:[%s2952_s5 + $0xf8] sm:$0xf0] }
  0xe0   :  { %1053 = vmatpush.bf16.msra.mxu3 %v1515_v45  ;;  %1066 = vmatpush.bf16.msrb.mxu0 %v1519_v46  ;;  %v1652_v45 = vld [vmem:[%s2952_s5 + $0x2f0] sm:$0xf0]  ;;  %v1658_v46 = vld [vmem:[%s2952_s5 + $0x2b8] sm:$0xf]  ;;  %v1651_v50 = vor.u32 %v1887_v42, %v1650_v41  ;;  %v1407_v41 = vor.u32 %v1816_v35, %v1404_v36 }
  0xe1   :  { %v1655_v52 = vor.u32 %v1879_v30, %v1652_v45  ;;  %v1799_v42 = vld [vmem:[%s2952_s5 + $0x34] sm:$0xf]  ;;  %v1808_v30 = vld [vmem:[%s2952_s5 + $0x74] sm:$0xf0]  ;;  %v1800_v45 = vld [vmem:[%s2952_s5 + $0x3c] sm:$0xf] }
  0xe3   :  { %1028 = vmatpush.bf16.msra.mxu1 %v1443_v54  ;;  %1041 = vmatpush.bf16.msra.mxu2 %v1447_v55  ;;  %v1871_v54 = vld [vmem:[%s2952_s5 + $0x26c] sm:$0xf0]  ;;  %v1659_v55 = vor.u32 %v1888_v48, %v1658_v46  ;;  %v1340_v46 = vld [vmem:[%s2952_s5 + $0x78] sm:$0xf0] }
  0xe4   :  { %1054 = vmatpush.bf16.msra.mxu3 %v1451_v58  ;;  %1067 = vmatpush.bf16.msrb.mxu0 %v1455_v59  ;;  %v1588_v58 = vld [vmem:[%s2952_s5 + $0x270] sm:$0xf0]  ;;  %v1594_v59 = vld [vmem:[%s2952_s5 + $0x238] sm:$0xf]  ;;  %v1587_v63 = vor.u32 %v1871_v54, %v1586_v53 }
  0xe5   :  { %v1591_v0 = vor.u32 %v1863_v57, %v1588_v58 }
  0xe7   :  { %1029 = vmatpush.bf16.msra.mxu1 %v1379_v4  ;;  %1042 = vmatpush.bf16.msra.mxu2 %v1383_v5  ;;  %v1595_v4 = vor.u32 %v1872_v60, %v1594_v59  ;;  %v1599_v5 = vor.u32 %v1864_v61, %v1596_v62 }
  0xe8   :  { %1055 = vmatpush.bf16.msra.mxu3 %v1387_v9  ;;  %1068 = vmatpush.bf16.msrb.mxu0 %v1391_v10  ;;  %v1856_v9 = vld [vmem:[%s2952_s5 + $0x1f4] sm:$0xf0]  ;;  %v1848_v10 = vld [vmem:[%s2952_s5 + $0x1bc] sm:$0xf] }
  0xe9   :  { %v1531_v16 = vor.u32 %v1856_v9, %v1530_v8  ;;  %v1535_v17 = vor.u32 %v1848_v10, %v1532_v11 }
  0xeb   :  { %1030 = vmatpush.bf16.msra.mxu1 %v1315_v20  ;;  %1043 = vmatpush.bf16.msra.mxu2 %v1319_v21  ;;  %v1466_v20 = vld [vmem:[%s2952_s5 + $0x138] sm:$0xf] }
  0xec   :  { %1056 = vmatpush.bf16.msra.mxu3 %v1323_v25  ;;  %1069 = vmatpush.bf16.msrb.mxu0 %v1327_v26  ;;  %v1840_v21 = vld [vmem:[%s2952_s5 + $0x174] sm:$0xf0]  ;;  %v1463_v25 = vor.u32 %v1831_v18, %v1460_v19  ;;  %v1394_v26 = vld [vmem:[%s2952_s5 + $0xb0] sm:$0xf] }
  0xee   :  { %1031 = vmatmul.bf16.vlgmr.msra.gmra.mxu1 %v2479_v47  ;;  %1044 = vmatmul.bf16.vlgmr.msra.gmra.mxu2 %v2479_v47 }
  0xef   :  { %1075 = vmatpush.bf16.msrb.mxu1 %v1779_v27  ;;  %1088 = vmatpush.bf16.msrb.mxu2 %v1783_v28  ;;  %v1823_v27 = vld [vmem:[%s2952_s5 + $0xec] sm:$0xf0]  ;;  %v1467_v28 = vor.u32 %v1840_v21, %v1466_v20 }
  0xf0   :  { %1101 = vmatpush.bf16.msrb.mxu3 %v1787_v32  ;;  %1114 = vmatpush.bf16.msra.mxu0 %v1791_v33  ;;  %v1396_v32 = vld [vmem:[%s2952_s5 + $0xf0] sm:$0xf0]  ;;  %v1402_v33 = vld [vmem:[%s2952_s5 + $0xb8] sm:$0xf]  ;;  %v1395_v3 = vor.u32 %v1823_v27, %v1394_v26  ;;  %v258_v26 = vperm.slane %v244_v14, 3  ;;  %v257_v27 = vperm.slane %v244_v14, 2 }
  0xf1   :  { %1057 = vmatmul.bf16.vlgmr.msra.gmra.mxu3 %v2479_v47  ;;  %1070 = vmatmul.bf16.vlgmr.msrb.gmra.mxu0 %v2479_v47  ;;  %v1399_v37 = vor.u32 %v1815_v31, %v1396_v32 }
  0xf3   :  { %1076 = vmatpush.bf16.msrb.mxu1 %v1715_v39  ;;  %1089 = vmatpush.bf16.msrb.mxu2 %v1719_v40  ;;  %v1807_v39 = vld [vmem:[%s2952_s5 + $0x6c] sm:$0xf0]  ;;  %v1403_v40 = vor.u32 %v1824_v34, %v1402_v33  ;;  %v259_v33 = vperm.slane %v244_v14, 4 }
  0xf4   :  { %1102 = vmatpush.bf16.msrb.mxu3 %v1723_v43  ;;  %1115 = vmatpush.bf16.msra.mxu0 %v1727_v44  ;;  %v1332_v43 = vld [vmem:[%s2952_s5 + $0x70] sm:$0xf0]  ;;  %v1338_v44 = vld [vmem:[%s2952_s5 + $0x38] sm:$0xf]  ;;  %v1331_v48 = vor.u32 %v1807_v39, %v1330_v38 }
  0xf5   :  { %v1335_v49 = vor.u32 %v1799_v42, %v1332_v43  ;;  %v1339_v51 = vor.u32 %v1808_v30, %v1338_v44  ;;  %v261_v44 = vperm.slane %v244_v14, 6 }
  0xf7   :  { %1077 = vmatpush.bf16.msrb.mxu1 %v1651_v50  ;;  %1090 = vmatpush.bf16.msrb.mxu2 %v1655_v52  ;;  %v1343_v50 = vor.u32 %v1800_v45, %v1340_v46 }
  0xf8   :  { %1103 = vmatpush.bf16.msrb.mxu3 %v1659_v55  ;;  %1116 = vmatpush.bf16.msra.mxu0 %v1663_v56 }
  0xfb   :  { %1078 = vmatpush.bf16.msrb.mxu1 %v1587_v63  ;;  %1091 = vmatpush.bf16.msrb.mxu2 %v1591_v0 }
  0xfc   :  { %1104 = vmatpush.bf16.msrb.mxu3 %v1595_v4  ;;  %1117 = vmatpush.bf16.msra.mxu0 %v1599_v5 }
  0xff   :  { %1079 = vmatpush.bf16.msrb.mxu1 %v1523_v12  ;;  %1092 = vmatpush.bf16.msrb.mxu2 %v1527_v13  ;;  %v243_v12 = vld [vmem:[%s2953_s6] sm:$0xff]  ;;  %s1991_s6 = smov [#allocation2]  }
 0x100   :  { %1105 = vmatpush.bf16.msrb.mxu3 %v1531_v16  ;;  %1118 = vmatpush.bf16.msra.mxu0 %v1535_v17  ;;  %v247_v13 = vperm.slane %v243_v12, 0  ;;  %v250_v15 = vperm.slane %v243_v12, 3  ;;  %v251_v16 = vperm.slane %v243_v12, 4  ;;  %v252_v17 = vperm.slane %v243_v12, 5  ;;  %s1264_s16 = sshll.u32 %s1991_s6, 4  ;;  %s1265_s16 = int_to_ptr.vmem [resolvable:$true] %s1264_s16 }
 0x101   :  { %v248_v18 = vperm.slane %v243_v12, 1  ;;  %v249_v19 = vperm.slane %v243_v12, 2  ;;  %v254_v20 = vperm.slane %v243_v12, 7  ;;  %v253_v21 = vperm.slane %v243_v12, 6 }
 0x103   :  { %1080 = vmatpush.bf16.msrb.mxu1 %v1459_v24  ;;  %1093 = vmatpush.bf16.msrb.mxu2 %v1463_v25  ;;  %v262_v24 = vperm.slane %v244_v14, 7 }
 0x104   :  { %1106 = vmatpush.bf16.msrb.mxu3 %v1467_v28  ;;  %1119 = vmatpush.bf16.msra.mxu0 %v1471_v29 }
 0x107   :  { %1081 = vmatpush.bf16.msrb.mxu1 %v1395_v3  ;;  %1094 = vmatpush.bf16.msrb.mxu2 %v1399_v37 }
 0x108   :  { %1107 = vmatpush.bf16.msrb.mxu3 %v1403_v40  ;;  %1120 = vmatpush.bf16.msra.mxu0 %v1407_v41  ;;  %v260_v41 = vperm.slane %v244_v14, 5 }
 0x10b   :  { %1082 = vmatpush.bf16.msrb.mxu1 %v1331_v48  ;;  %1095 = vmatpush.bf16.msrb.mxu2 %v1335_v49 }
 0x10c   :  { %1108 = vmatpush.bf16.msrb.mxu3 %v1339_v51  ;;  %1121 = vmatpush.bf16.msra.mxu0 %v1343_v50 }
 0x10e   :  { %1083 = vmatmul.bf16.vlgmr.msrb.gmra.mxu1 %v2479_v47  ;;  %1096 = vmatmul.bf16.vlgmr.msrb.gmra.mxu2 %v2479_v47 }
 0x10f   :  { %1109 = vmatmul.bf16.vlgmr.msrb.gmra.mxu3 %v2479_v47  ;;  %1122 = vmatmul.bf16.vlgmr.msra.gmra.mxu0 %v2479_v47 }
 0x14a   :  { %v928_v52 = vpop.f32.mrf.mxu1 }
 0x14b   :  { %v967_v53 = vpop.f32.mrf.mxu0  ;;  %v929_v25 = vadd.f32 %v928_v52, %v247_v13 }
 0x14c   :  { %v968_v29 = vadd.f32 %v967_v53, %v250_v15 }
 0x150   :  { %v941_v54 = vpop.f32.mrf.mxu2 }
 0x151   :  { %v954_v55 = vpop.f32.mrf.mxu3  ;;  %v942_v35 = vadd.f32 %v941_v54, %v248_v18 }
 0x152   :  { %v930_v56 = vpop.f32.mrf.mxu1  ;;  %v955_v36 = vadd.f32 %v954_v55, %v249_v19 }
 0x153   :  { %v969_v57 = vpop.f32.mrf.mxu0 }
 0x158   :  { %v943_v58 = vpop.f32.mrf.mxu2 }
 0x159   :  { %v956_v59 = vpop.f32.mrf.mxu3 }
 0x15a   :  { %v980_v60 = vpop.f32.mrf.mxu1 }
 0x15b   :  { %v1019_v61 = vpop.f32.mrf.mxu0  ;;  %v981_v31 = vadd.f32 %v980_v60, %v251_v16 }
 0x15c   :  { %v2863_v3 = vadd.f32 %v1019_v61, %v254_v20 }
 0x15d   :  { %v1127_v30 = vmax.f32 %v929_v25, %v981_v31 }
 0x15e   :  { %v1130_v48 = vmax.f32 %v968_v29, %v2863_v3 }
 0x160   :  { %v993_v62 = vpop.f32.mrf.mxu2 }
 0x161   :  { %v1006_v63 = vpop.f32.mrf.mxu3  ;;  %v994_v32 = vadd.f32 %v993_v62, %v252_v17 }
 0x162   :  { %v982_v0 = vpop.f32.mrf.mxu1  ;;  %v1007_v37 = vadd.f32 %v1006_v63, %v253_v21 }
 0x163   :  { %v1021_v1 = vpop.f32.mrf.mxu0  ;;  %v1128_v45 = vmax.f32 %v942_v35, %v994_v32 }
 0x164   :  { %v1129_v49 = vmax.f32 %v955_v36, %v1007_v37 }
 0x168   :  { %v995_v2 = vpop.f32.mrf.mxu2 }
 0x169   :  { %v1008_v4 = vpop.f32.mrf.mxu3 }
 0x16b   :  { %v1032_v5 = vpop.f32.mrf.mxu1 }
 0x16c   :  { %v2865_v38 = vadd.f32 %v1032_v5, %v255_v22 }
 0x16e   :  { %v1071_v6 = vpop.f32.mrf.mxu0  ;;  %v1131_v50 = vmax.f32 %v1127_v30, %v2865_v38 }
 0x16f   :  { %v2871_v42 = vadd.f32 %v1071_v6, %v258_v26 }
 0x171   :  { %v1045_v7 = vpop.f32.mrf.mxu2  ;;  %v1134_v56 = vmax.f32 %v1130_v48, %v2871_v42 }
 0x172   :  { %v2867_v39 = vadd.f32 %v1045_v7, %v256_v23 }
 0x173   :  { %v1034_v8 = vpop.f32.mrf.mxu1 }
 0x174   :  { %v1058_v47 = vpop.f32.mrf.mxu3  ;;  %v1132_v52 = vmax.f32 %v1128_v45, %v2867_v39 }
 0x175   :  { %v2873_v43 = vadd.f32 %v1058_v47, %v257_v27 }
 0x176   :  { %v1073_v9 = vpop.f32.mrf.mxu0 }
 0x177   :  { %v1133_v57 = vmax.f32 %v1129_v49, %v2873_v43 }
 0x179   :  { %v1047_v10 = vpop.f32.mrf.mxu2 }
 0x17c   :  { %v1060_v11 = vpop.f32.mrf.mxu3 }
 0x18b   :  { %v1084_v28 = vpop.f32.mrf.mxu1 }
 0x18c   :  { %v1123_v34 = vpop.f32.mrf.mxu0  ;;  %v2875_v46 = vadd.f32 %v1084_v28, %v259_v33 }
 0x18d   :  { %v2869_v40 = vadd.f32 %v1123_v34, %v262_v24 }
 0x18e   :  { %v1135_v60 = vmax.f32 %v1131_v50, %v2875_v46 }
 0x18f   :  { %v1139_v53 = vsel %vm1138_vm7, %v2869_v40, -inf }
 0x190   :  { %v1140_v63 = vmax.f32 %v1134_v56, %v1139_v53 }
 0x191   :  { %v1097_v51 = vpop.f32.mrf.mxu2 }
 0x192   :  { %v2882_v54 = vadd.f32 %v1097_v51, %v260_v41  ;;  %v1110_v55 = vpop.f32.mrf.mxu3 }
 0x193   :  { %v2886_v58 = vadd.f32 %v1110_v55, %v261_v44  ;;  %v1086_v59 = vpop.f32.mrf.mxu1 }
 0x194   :  { %v1136_v61 = vmax.f32 %v1132_v52, %v2882_v54  ;;  %v1125_v62 = vpop.f32.mrf.mxu0 }
 0x195   :  { %v1137_v0 = vmax.f32 %v1133_v57, %v2886_v58 }
 0x196   :  { %v1141_v1 = vmax.f32 %v1135_v60, %v1136_v61 }
 0x197   :  { %v1142_v2 = vmax.f32 %v1137_v0, %v1140_v63 }
 0x199   :  { %v1099_v4 = vpop.f32.mrf.mxu2  ;;  %v1143_v5 = vmax.f32 %v1141_v1, %v1142_v2 }
 0x19a   :  { %v1112_v6 = vpop.f32.mrf.mxu3 }
 0x19b   :  { %1144 = vmax.xlane.f32.xlu0 %v1143_v5 }
 0x20e   :  { %v2891_v7 = vpop.xlane.xlu0 %1144 }
 0x20f   :  { %v1146_v47 = vsub.f32 %v929_v25, %v2891_v7  ;;  %v1147_v8 = vsub.f32 %v942_v35, %v2891_v7  ;;  %v1148_v9 = vsub.f32 %v955_v36, %v2891_v7  ;;  %v1149_v10 = vsub.f32 %v968_v29, %v2891_v7 }
 0x210   :  { %v1150_v13 = vsub.f32 %v981_v31, %v2891_v7  ;;  %v1151_v15 = vsub.f32 %v994_v32, %v2891_v7  ;;  %v1152_v17 = vsub.f32 %v1007_v37, %v2891_v7  ;;  %v1153_v19 = vsub.f32 %v2863_v3, %v2891_v7 }
 0x211   :  { %v1162_v11 = vmul.f32 1.442695, %v1146_v47  ;;  %v1164_v12 = vmul.f32 1.442695, %v1147_v8  ;;  %v1166_v14 = vmul.f32 1.442695, %v1148_v9  ;;  %v1154_v23 = vsub.f32 %v2865_v38, %v2891_v7 }
 0x212   :  { %v1168_v16 = vmul.f32 1.442695, %v1149_v10  ;;  %v1170_v18 = vmul.f32 1.442695, %v1150_v13  ;;  %v1172_v20 = vmul.f32 1.442695, %v1151_v15  ;;  %v1155_v27 = vsub.f32 %v2867_v39, %v2891_v7 }
 0x213   :  { %1930 = vpow2.f32 %v1162_v11  ;;  %v1174_v24 = vmul.f32 1.442695, %v1152_v17  ;;  %v1176_v28 = vmul.f32 1.442695, %v1153_v19  ;;  %v1156_v32 = vsub.f32 %v2873_v43, %v2891_v7 }
 0x214   :  { %1932 = vpow2.f32 %v1164_v12  ;;  %v1178_v33 = vmul.f32 1.442695, %v1154_v23  ;;  %v1157_v36 = vsub.f32 %v2871_v42, %v2891_v7  ;;  %v1180_v3 = vmul.f32 1.442695, %v1155_v27 }
 0x215   :  { %1934 = vpow2.f32 %v1166_v14  ;;  %v1158_v39 = vsub.f32 %v2875_v46, %v2891_v7  ;;  %v1182_v41 = vmul.f32 1.442695, %v1156_v32  ;;  %v1159_v30 = vsub.f32 %v2882_v54, %v2891_v7 }
 0x216   :  { %1936 = vpow2.f32 %v1168_v16  ;;  %v1184_v45 = vmul.f32 1.442695, %v1157_v36  ;;  %v1161_v42 = vsub.f32 %v2869_v40, %v2891_v7  ;;  %v1160_v51 = vsub.f32 %v2886_v58, %v2891_v7 }
 0x217   :  { %1938 = vpow2.f32 %v1170_v18  ;;  %v1186_v46 = vmul.f32 1.442695, %v1158_v39  ;;  %v1188_v53 = vmul.f32 1.442695, %v1159_v30 }
 0x218   :  { %1940 = vpow2.f32 %v1172_v20  ;;  %v1192_v55 = vmul.f32 1.442695, %v1161_v42  ;;  %v1190_v54 = vmul.f32 1.442695, %v1160_v51 }
 0x219   :  { %v2902_v21 = vpop.eup %1930  ;;  %1942 = vpow2.f32 %v1174_v24 }
 0x21a   :  { %v2904_v22 = vpop.eup %1932  ;;  %1944 = vpow2.f32 %v1176_v28 }
 0x21b   :  { %v1194_v25 = vadd.f32 %v2904_v22, %v2902_v21  ;;  %v2910_v26 = vpop.eup %1934  ;;  %1946 = vpow2.f32 %v1178_v33 }
 0x21c   :  { %v2915_v31 = vpop.eup %1936  ;;  %1948 = vpow2.f32 %v1180_v3 }
 0x21d   :  { %v1195_v29 = vadd.f32 %v2910_v26, %v1194_v25  ;;  %v2920_v35 = vpop.eup %1938  ;;  %1950 = vpow2.f32 %v1182_v41 }
 0x21e   :  { %v2925_v38 = vpop.eup %1940  ;;  %1952 = vpow2.f32 %v1184_v45 }
 0x21f   :  { %v1196_v34 = vadd.f32 %v2915_v31, %v1195_v29  ;;  %v1943_v44 = vpop.eup %1942  ;;  %1954 = vpow2.f32 %v1186_v46 }
 0x220   :  { %v1945_v49 = vpop.eup %1944  ;;  %1956 = vpow2.f32 %v1188_v53 }
 0x221   :  { %v1197_v37 = vadd.f32 %v2920_v35, %v1196_v34  ;;  %v1947_v52 = vpop.eup %1946  ;;  %1958 = vpow2.f32 %v1192_v55 }
 0x222   :  { %v1949_v57 = vpop.eup %1948  ;;  %1960 = vpow2.f32 %v1190_v54 }
 0x223   :  { %v1198_v43 = vadd.f32 %v2925_v38, %v1197_v37  ;;  %v1951_v60 = vpop.eup %1950 }
 0x224   :  { %v1953_v61 = vpop.eup %1952 }
 0x225   :  { %v1199_v48 = vadd.f32 %v1943_v44, %v1198_v43  ;;  %v1955_v58 = vpop.eup %1954 }
 0x226   :  { %v1957_v0 = vpop.eup %1956 }
 0x227   :  { %v1200_v50 = vadd.f32 %v1945_v49, %v1199_v48  ;;  %v1959_v1 = vpop.eup %1958 }
 0x228   :  { %v1961_v4 = vpop.eup %1960  ;;  %v1208_v6 = vsel %vm1138_vm7, %v1959_v1, 0.0 }
 0x229   :  { %v1201_v56 = vadd.f32 %v1947_v52, %v1200_v50 }
 0x22b   :  { %v1202_v59 = vadd.f32 %v1949_v57, %v1201_v56 }
 0x22d   :  { %v1203_v40 = vadd.f32 %v1951_v60, %v1202_v59 }
 0x22f   :  { %v1204_v62 = vadd.f32 %v1953_v61, %v1203_v40 }
 0x231   :  { %v1205_v63 = vadd.f32 %v1955_v58, %v1204_v62 }
 0x233   :  { %v1206_v2 = vadd.f32 %v1957_v0, %v1205_v63 }
 0x235   :  { %v1207_v5 = vadd.f32 %v1961_v4, %v1206_v2 }
 0x237   :  { %v1209_v7 = vadd.f32 %v1208_v6, %v1207_v5 }
 0x239   :  { %1210 = vadd.xlane.f32.xlu0 %v1209_v7 }
 0x2ac   :  { %v1211_v47 = vpop.xlane.xlu0 %1210 }
 0x2ad   :  { %1962 = vrcp.f32 %v1211_v47  ;;  %v1223_v11 = vand.u32 2147483648, %v1211_v47  ;;  %v1221_v13 = vand.u32 2147483647, %v1211_v47  ;;  %vm1217_vm9 = vweird.f32 %v1211_v47 }
 0x2af   :  { %v1224_v15 = vor.u32 1.1754944e-38, %v1223_v11  ;;  %vm1222_vm11 = vcmp.eq.f32.partialorder %v1221_v13, 8.507059e+37 }
 0x2b3   :  { %v1963_v8 = vpop.eup %1962 }
 0x2b4   :  { %v1213_v9 = vmul.f32 %v1963_v8, %v1211_v47  ;;  %vm1218_vm8 = vweird.f32 %v1963_v8 }
 0x2b5   :  { %vm1219_vm10 = vmor %vm1217_vm9, %vm1218_vm8 }
 0x2b6   :  { %v1214_v10 = vsub.f32 1.0, %v1213_v9 }
 0x2b8   :  { %v1215_v12 = vmul.f32 %v1963_v8, %v1214_v10 }
 0x2ba   :  { %v1216_v14 = vadd.f32 %v1963_v8, %v1215_v12 }
 0x2bc   :  { %v1220_v16 = vsel %vm1219_vm10, %v1963_v8, %v1216_v14 }
 0x2bd   :  { %v1225_v17 = vsel %vm1222_vm11, %v1224_v15, %v1220_v16 }
 0x2be   :  { %v1227_v18 = vmul.f32 %v2902_v21, %v1225_v17  ;;  %v1228_v19 = vmul.f32 %v2904_v22, %v1225_v17  ;;  %v1229_v20 = vmul.f32 %v2910_v26, %v1225_v17  ;;  %v1230_v23 = vmul.f32 %v2915_v31, %v1225_v17 }
 0x2bf   :  { %v1231_v24 = vmul.f32 %v2920_v35, %v1225_v17  ;;  %v1232_v25 = vmul.f32 %v2925_v38, %v1225_v17  ;;  %v1233_v27 = vmul.f32 %v1943_v44, %v1225_v17  ;;  %v1234_v28 = vmul.f32 %v1945_v49, %v1225_v17 }
 0x2c0   :  { %1243 = vst [vmem:[#allocation2] sm:$0xff] %v1227_v18  ;;  %v1235_v29 = vmul.f32 %v1947_v52, %v1225_v17  ;;  %v1236_v32 = vmul.f32 %v1949_v57, %v1225_v17  ;;  %v1237_v21 = vmul.f32 %v1951_v60, %v1225_v17  ;;  %v1238_v22 = vmul.f32 %v1953_v61, %v1225_v17 }
 0x2c1   :  { %1244 = vst [vmem:[#allocation2 + $0x8] sm:$0xff] %v1228_v19  ;;  %v1239_v26 = vmul.f32 %v1955_v58, %v1225_v17  ;;  %v1240_v31 = vmul.f32 %v1957_v0, %v1225_v17  ;;  %v1241_v33 = vmul.f32 %v1961_v4, %v1225_v17  ;;  %v1242_v34 = vmul.f32 %v1959_v1, %v1225_v17 }
 0x2c2   :  { %1245 = vst [vmem:[#allocation2 + $0x10] sm:$0xff] %v1229_v20 }
 0x2c3   :  { %1246 = vst [vmem:[#allocation2 + $0x18] sm:$0xff] %v1230_v23 }
 0x2c4   :  { %1247 = vst [vmem:[#allocation2 + $0x20] sm:$0xff] %v1231_v24 }
 0x2c5   :  { %1248 = vst [vmem:[#allocation2 + $0x28] sm:$0xff] %v1232_v25 }
 0x2c6   :  { %1249 = vst [vmem:[#allocation2 + $0x30] sm:$0xff] %v1233_v27 }
 0x2c7   :  { %1250 = vst [vmem:[#allocation2 + $0x38] sm:$0xff] %v1234_v28 }
 0x2c8   :  { %1251 = vst [vmem:[#allocation2 + $0x40] sm:$0xff] %v1235_v29 }
 0x2c9   :  { %1252 = vst [vmem:[#allocation2 + $0x48] sm:$0xff] %v1236_v32 }
 0x2ca   :  { %1253 = vst [vmem:[#allocation2 + $0x50] sm:$0xff] %v1237_v21 }
 0x2cb   :  { %1254 = vst [vmem:[#allocation2 + $0x58] sm:$0xff] %v1238_v22 }
 0x2cc   :  { %1255 = vst [vmem:[#allocation2 + $0x60] sm:$0xff] %v1239_v26 }
 0x2cd   :  { %1256 = vst [vmem:[#allocation2 + $0x68] sm:$0xff] %v1240_v31 }
 0x2ce   :  { %1257 = vst [vmem:[#allocation2 + $0x70] sm:$0xff] %v1241_v33 }
 0x2cf   :  { %1258 = vst.msk [vmem:[#allocation2 + $0x78] sm:$0xff] %vm1138_vm7, %v1242_v34 }
 0x2d0   :  { %1269 = dma.vmem_to_hbm [thread:$0]  %s1265_s16, 2048, %s1267_s4, [#allocation3]  }
 0x2d1   :  { %1988 = dma.done.wait [#allocation3], 2048  }
 0x2d2   :  { %1989 = vsyncadd [#allocation3], 4294965248 }
 0x2d3   :  { %1274 = vsyncpa [#allocation3], 1 }

</bundles_post_ra>
